<compile_context>
chip_gen: v7x
topology: tpu7x:2x2x1
jax: 0.10.0
libtpu: 0.0.40
codegen_flags: <defaults>
</compile_context>

<pallas_src>
import jax
import jax.numpy as jnp
from jax.experimental import pallas as pl
from jax.experimental.pallas import tpu as pltpu

EPS = 1e-5  # torch.nn.LayerNorm default


# --------------------------------------------------------------------------- #
# Helpers
# --------------------------------------------------------------------------- #
def _round_up(n, m):
    return ((n + m - 1) // m) * m


def _vmem_capacity_bytes():
    """Physical per-core VMEM; falls back to the smallest (v7x, 64 MiB) figure."""
    try:
        info = pltpu.get_tpu_info()
        cap = int(getattr(info, "vmem_capacity_bytes", 0))
        if cap > 0:
            return cap
    except Exception:
        pass
    return 64 * 1024 * 1024


_TM_CANDIDATES = (1024, 768, 512, 384, 256, 192, 128, 96, 64, 32, 24, 16, 8)


def _pick_tile_m(rows, preferred, tm_cap):
    """Largest 8-aligned row tile <= min(preferred, tm_cap) with <=~25% padding waste."""
    rows8 = _round_up(rows, 8)
    cap = min(int(preferred), int(tm_cap), rows8)
    cap = max(8, (cap // 8) * 8)
    for t in _TM_CANDIDATES:
        if t > cap:
            continue
        waste = _round_up(rows8, t) - rows8
        if waste <= max(rows8 // 4, 8):
            return t
    return 8


def _layernorm_f32(x, gamma, beta):
    """Row-wise LayerNorm in f32 (centered variance, torch semantics)."""
    xf = x.astype(jnp.float32)
    inv_d = jnp.float32(1.0 / xf.shape[-1])
    mean = jnp.sum(xf, axis=-1, keepdims=True) * inv_d
    xc = xf - mean
    var = jnp.sum(xc * xc, axis=-1, keepdims=True) * inv_d
    return xc * jax.lax.rsqrt(var + EPS) * gamma.astype(jnp.float32) + beta.astype(jnp.float32)


# --------------------------------------------------------------------------- #
# Kernels
# --------------------------------------------------------------------------- #
def _prenorm_resident_kernel(x_ref, g_ref, b_ref, w_ref, wb_ref, o_ref):
    # Full (D, D) weight resident in VMEM (constant block index -> fetched once).
    # x_ref: (TM, D), g/b: (1, D), w_ref: (D, D), wb_ref: (1, D), o_ref: (TM, D)
    y = _layernorm_f32(x_ref[...], g_ref[...], b_ref[...]).astype(w_ref.dtype)
    out = jnp.dot(y, w_ref[...], preferred_element_type=jnp.float32)
    o_ref[...] = (out + wb_ref[...].astype(jnp.float32)).astype(o_ref.dtype)


def _prenorm_tiled_kernel(x_ref, g_ref, b_ref, w_ref, wb_ref, o_ref, y_ref):
    # Column-streamed weight: grid = (row tiles, output-column tiles).
    # LayerNorm is computed once per row tile (j == 0) and carried in y_ref.
    j = pl.program_id(1)

    def matmul_store(y_op):
        out = jnp.dot(y_op, w_ref[...], preferred_element_type=jnp.float32)
        out = out + wb_ref[...].astype(jnp.float32)
        o_ref[...] = out.astype(o_ref.dtype)

    @pl.when(j == 0)
    def _():
        y = _layernorm_f32(x_ref[...], g_ref[...], b_ref[...]).astype(y_ref.dtype)
        y_ref[...] = y          # carried across the remaining j tiles
        matmul_store(y)         # use the fresh value: no VMEM round trip

    @pl.when(j != 0)
    def _():
        matmul_store(y_ref[...])


# --------------------------------------------------------------------------- #
# Wrapper
# --------------------------------------------------------------------------- #
def prenorm_linear(x, ln_gamma, ln_beta, w, wb, *, tile_m=None, tile_n=None):
    """PreNorm(dim, Linear(dim, dim)) forward.

    x:        (B, S, D)
    ln_gamma: (D,)   LayerNorm weight
    ln_beta:  (D,)   LayerNorm bias
    w:        (D, D) Linear weight, (in, out) layout
    wb:       (D,)   Linear bias
    """
    B, S, D = x.shape
    rows = B * S
    x_bytes = jnp.dtype(x.dtype).itemsize
    w_bytes = jnp.dtype(w.dtype).itemsize
    o_bytes = x_bytes

    vmem_cap = _vmem_capacity_bytes()
    # 48 MiB usable on v7x (64 MiB phys), 112 MiB on v5e/v6e (128 MiB phys).
    vmem_limit = max(32 * 1024 * 1024, vmem_cap - 16 * 1024 * 1024)
    budget = int(vmem_limit * 0.9)          # headroom for compiler scratch

    params_b = 2 * 3 * D * 4                # gamma/beta/bias, double-buffered

    x2 = x.reshape(rows, D)
    g2 = ln_gamma.reshape(1, D)
    b2 = ln_beta.reshape(1, D)
    wb2 = wb.reshape(1, D)

    # ------------------- resident-W fast path ------------------------------ #
    w_resident_b = 2 * D * D * w_bytes      # count 2 buffers (conservative)
    per_row_b = 2 * D * (x_bytes + o_bytes)
    rem = budget - w_resident_b - params_b
    resident_fits = rem > 0 and (rem // per_row_b) >= 8

    if tile_n is None and resident_fits:
        tm_cap = rem // per_row_b
        tm = _pick_tile_m(rows, tile_m or 256, tm_cap)
        rows_p = _round_up(rows, tm)
        if rows_p != rows:
            x2 = jnp.pad(x2, ((0, rows_p - rows), (0, 0)))

        out = pl.pallas_call(
            _prenorm_resident_kernel,
            out_shape=jax.ShapeDtypeStruct((rows_p, D), x.dtype),
            grid_spec=pltpu.PrefetchScalarGridSpec(
                num_scalar_prefetch=0,
                grid=(rows_p // tm,),
                in_specs=[
                    pl.BlockSpec((tm, D), lambda i: (i, 0)),    # x row tile
                    pl.BlockSpec((1, D), lambda i: (0, 0)),     # gamma
                    pl.BlockSpec((1, D), lambda i: (0, 0)),     # beta
                    pl.BlockSpec((D, D), lambda i: (0, 0)),     # W (resident)
                    pl.BlockSpec((1, D), lambda i: (0, 0)),     # linear bias
                ],
                out_specs=pl.BlockSpec((tm, D), lambda i: (i, 0)),
            ),
            compiler_params=pltpu.CompilerParams(
                dimension_semantics=("parallel",),
                vmem_limit_bytes=vmem_limit,
            ),
        )(x2, g2, b2, w, wb2)
        return out[:rows].reshape(B, S, D)

    # ------------------- column-tiled W path (large D) --------------------- #
    # tile_m first: W-stream arithmetic intensity scales with tile_m.
    tn_min = 128
    fixed = 2 * D * tn_min * w_bytes + params_b
    per_m = D * w_bytes + 2 * D * x_bytes + 2 * tn_min * o_bytes
    tm_cap = max(8, (budget - fixed) // per_m) if budget > fixed else 8
    tm = _pick_tile_m(rows, tile_m or 512, tm_cap)

    # tile_n second: prefer 256-multiples (v6e/v7x MXU); 128 is the fallback.
    if tile_n is None:
        rem2 = budget - (tm * D * w_bytes + 2 * tm * D * x_bytes + params_b)
        per_n = 2 * D * w_bytes + 2 * tm * o_bytes
        tn_cap = rem2 // per_n if rem2 > 0 else 128
        tn = 128
        for cand in (1024, 768, 512, 256, 384, 128):
            if cand > tn_cap:
                continue
            if _round_up(D, cand) - D <= max(D // 8, 127):
                tn = cand
                break
    else:
        tn = max(128, int(tile_n))

    n_pad = _round_up(D, tn)
    w_p, wb_p = w, wb2
    if n_pad != D:
        w_p = jnp.pad(w, ((0, 0), (0, n_pad - D)))
        wb_p = jnp.pad(wb2, ((0, 0), (0, n_pad - D)))

    rows_p = _round_up(rows, tm)
    if rows_p != rows:
        x2 = jnp.pad(x2, ((0, rows_p - rows), (0, 0)))

    out = pl.pallas_call(
        _prenorm_tiled_kernel,
        out_shape=jax.ShapeDtypeStruct((rows_p, n_pad), x.dtype),
        grid_spec=pltpu.PrefetchScalarGridSpec(
            num_scalar_prefetch=0,
            grid=(rows_p // tm, n_pad // tn),
            in_specs=[
                pl.BlockSpec((tm, D), lambda i, j: (i, 0)),      # x row tile
                pl.BlockSpec((1, D), lambda i, j: (0, 0)),       # gamma
                pl.BlockSpec((1, D), lambda i, j: (0, 0)),       # beta
                pl.BlockSpec((D, tn), lambda i, j: (0, j)),      # W column tile
                pl.BlockSpec((1, tn), lambda i, j: (0, j)),      # linear bias tile
            ],
            out_specs=pl.BlockSpec((tm, tn), lambda i, j: (i, j)),
            scratch_shapes=[pltpu.VMEM((tm, D), w.dtype)],       # normalized y
        ),
        compiler_params=pltpu.CompilerParams(
            # Row axis independent (megacore / v7x 2-TC sharding); N axis
            # carries the LayerNorm scratch -> must stay sequential.
            dimension_semantics=("parallel", "arbitrary"),
            vmem_limit_bytes=vmem_limit,
        ),
    )(x2, g2, b2, w_p, wb_p)
    return out[:rows, :D].reshape(B, S, D)


# --------------------------------------------------------------------------- #
# Reference + demo
# --------------------------------------------------------------------------- #
def _reference(x, ln_gamma, ln_beta, w, wb):
    xf = x.astype(jnp.float32)
    mean = jnp.mean(xf, axis=-1, keepdims=True)
    var = jnp.mean((xf - mean) ** 2, axis=-1, keepdims=True)
    y = (xf - mean) / jnp.sqrt(var + EPS) * ln_gamma.astype(jnp.float32) \
        + ln_beta.astype(jnp.float32)
    return (y @ w.astype(jnp.float32) + wb.astype(jnp.float32)).astype(x.dtype)


if __name__ == "__main__":
    B, S, D = 2, 8, 32  # batch=2, seq=8, hidden dim=32

    key = jax.random.PRNGKey(0)
    kx, kw, kb = jax.random.split(key, 3)

    x = jax.random.normal(kx, (B, S, D), dtype=jnp.float32)

    # Deterministic parameter init (LayerNorm: gamma=1, beta=0 as in torch).
    ln_gamma = jnp.ones((D,), dtype=jnp.float32)
    ln_beta = jnp.zeros((D,), dtype=jnp.float32)
    # fn = Linear(D, D), small deterministic random weights.
    w = jax.random.normal(kw, (D, D), dtype=jnp.float32) * 0.02
    wb = jax.random.normal(kb, (D,), dtype=jnp.float32) * 0.02

    ref = _reference(x, ln_gamma, ln_beta, w, wb)

    # f32, resident-W path: correctness vs. reference.
    out = jax.block_until_ready(prenorm_linear(x, ln_gamma, ln_beta, w, wb))
    assert out.shape == (B, S, D)
    assert jnp.allclose(out, ref, atol=1e-4, rtol=1e-4), "mismatch vs reference"

    # f32, forced column-tiled path: exercises the scratch-carry kernel too.
    out_tiled = jax.block_until_ready(
        prenorm_linear(x, ln_gamma, ln_beta, w, wb, tile_n=128))
    assert jnp.allclose(out_tiled, ref, atol=1e-4, rtol=1e-4), "tiled path mismatch"

    # bf16 path: exercises the native-dtype MXU route (smoke check only).
    out_bf16 = jax.block_until_ready(prenorm_linear(
        x.astype(jnp.bfloat16),
        ln_gamma.astype(jnp.bfloat16),
        ln_beta.astype(jnp.bfloat16),
        w.astype(jnp.bfloat16),
        wb.astype(jnp.bfloat16),
    ))
    assert out_bf16.shape == (B, S, D)
    assert bool(jnp.all(jnp.isfinite(out_bf16.astype(jnp.float32))))

    # TODO(synk): `fn` in PreNorm is an arbitrary module; this kernel fuses the
    # representative Linear(dim, dim) case. Other `fn`s need their own fusion.
    print("KERNEL_OK")
</pallas_src>

<mosaic_0001>
module attributes {stable_mosaic.version = 11 : i64} {
  func.func @_prenorm_resident_kernel(%arg0: i32, %arg1: memref<16x32xf32, #tpu.memory_space<vmem>>, %arg2: memref<1x32xf32, #tpu.memory_space<vmem>>, %arg3: memref<1x32xf32, #tpu.memory_space<vmem>>, %arg4: memref<32x32xf32, #tpu.memory_space<vmem>>, %arg5: memref<1x32xf32, #tpu.memory_space<vmem>>, %arg6: memref<16x32xf32, #tpu.memory_space<vmem>>) attributes {dimension_semantics = [#tpu.dimension_semantics<parallel>], iteration_bounds = array<i64: 1>, scalar_prefetch = 0 : i64, scratch_operands = 0 : i64, tpu.core_type = #tpu.core_type<tc>, window_params = [{transform_indices = @transform_0, window_bounds = array<i64: 16, 32>}, {pipeline_mode = #tpu.pipeline_mode<synchronous>, transform_indices = @transform_1, window_bounds = array<i64: 1, 32>}, {pipeline_mode = #tpu.pipeline_mode<synchronous>, transform_indices = @transform_2, window_bounds = array<i64: 1, 32>}, {pipeline_mode = #tpu.pipeline_mode<synchronous>, transform_indices = @transform_3, window_bounds = array<i64: 32, 32>}, {pipeline_mode = #tpu.pipeline_mode<synchronous>, transform_indices = @transform_4, window_bounds = array<i64: 1, 32>}, {transform_indices = @transform_5, window_bounds = array<i64: 16, 32>}]} {
    %c0 = arith.constant 0 : index
    %c0_0 = arith.constant 0 : index
    %0 = vector.load %arg1[%c0, %c0_0] : memref<16x32xf32, #tpu.memory_space<vmem>>, vector<16x32xf32>
    %c0_1 = arith.constant 0 : index
    %c0_2 = arith.constant 0 : index
    %1 = vector.load %arg2[%c0_1, %c0_2] : memref<1x32xf32, #tpu.memory_space<vmem>>, vector<1x32xf32>
    %c0_3 = arith.constant 0 : index
    %c0_4 = arith.constant 0 : index
    %2 = vector.load %arg3[%c0_3, %c0_4] : memref<1x32xf32, #tpu.memory_space<vmem>>, vector<1x32xf32>
    %cst = arith.constant dense<0.000000e+00> : vector<16xf32>
    %3 = vector.multi_reduction <add>, %0, %cst [1] : vector<16x32xf32> to vector<16xf32>
    %4 = vector.shape_cast %3 : vector<16xf32> to vector<16x1xf32>
    %cst_5 = arith.constant 3.125000e-02 : f32
    %5 = vector.broadcast %cst_5 : f32 to vector<16x1xf32>
    %6 = arith.mulf %4, %5 : vector<16x1xf32>
    %7 = vector.broadcast %6 : vector<16x1xf32> to vector<16x32xf32>
    %8 = arith.subf %0, %7 : vector<16x32xf32>
    %9 = arith.mulf %8, %8 : vector<16x32xf32>
    %cst_6 = arith.constant dense<0.000000e+00> : vector<16xf32>
    %10 = vector.multi_reduction <add>, %9, %cst_6 [1] : vector<16x32xf32> to vector<16xf32>
    %11 = vector.shape_cast %10 : vector<16xf32> to vector<16x1xf32>
    %cst_7 = arith.constant 3.125000e-02 : f32
    %12 = vector.broadcast %cst_7 : f32 to vector<16x1xf32>
    %13 = arith.mulf %11, %12 : vector<16x1xf32>
    %cst_8 = arith.constant 9.99999974E-6 : f32
    %14 = vector.broadcast %cst_8 : f32 to vector<16x1xf32>
    %15 = arith.addf %13, %14 : vector<16x1xf32>
    %16 = math.rsqrt %15 : vector<16x1xf32>
    %17 = vector.broadcast %16 : vector<16x1xf32> to vector<16x32xf32>
    %18 = arith.mulf %8, %17 : vector<16x32xf32>
    %19 = vector.broadcast %1 : vector<1x32xf32> to vector<16x32xf32>
    %20 = arith.mulf %18, %19 : vector<16x32xf32>
    %21 = vector.broadcast %2 : vector<1x32xf32> to vector<16x32xf32>
    %22 = arith.addf %20, %21 : vector<16x32xf32>
    %c0_9 = arith.constant 0 : index
    %c0_10 = arith.constant 0 : index
    %23 = vector.load %arg4[%c0_9, %c0_10] : memref<32x32xf32, #tpu.memory_space<vmem>>, vector<32x32xf32>
    %cst_11 = arith.constant dense<0.000000e+00> : vector<16x32xf32>
    %24 = tpu.matmul %22, %23, %cst_11 {dimension_numbers = #tpu.dot_dimension_numbers<[1], [0], [0], [1], [0, 0, 1, 1], [], []>} : vector<16x32xf32>, vector<32x32xf32>, vector<16x32xf32> -> vector<16x32xf32>
    %c0_12 = arith.constant 0 : index
    %c0_13 = arith.constant 0 : index
    %25 = vector.load %arg5[%c0_12, %c0_13] : memref<1x32xf32, #tpu.memory_space<vmem>>, vector<1x32xf32>
    %26 = vector.broadcast %25 : vector<1x32xf32> to vector<16x32xf32>
    %27 = arith.addf %24, %26 : vector<16x32xf32>
    %c0_14 = arith.constant 0 : index
    %c0_15 = arith.constant 0 : index
    %28 = vector.load %arg6[%c0_14, %c0_15] : memref<16x32xf32, #tpu.memory_space<vmem>>, vector<16x32xf32>
    tpu.vector_store %arg6[%c0_14, %c0_15], %27 {strides = array<i32>} : memref<16x32xf32, #tpu.memory_space<vmem>>, vector<16x32xf32>,
    return
  }
  func.func @transform_0(%arg0: i32) -> (i32, i32) {
    %c0_i32 = arith.constant 0 : i32
    %c0_i32_0 = arith.constant 0 : i32
    return %arg0, %c0_i32 : i32, i32
  }
  func.func @transform_1(%arg0: i32) -> (i32, i32) {
    %c0_i32 = arith.constant 0 : i32
    %c0_i32_0 = arith.constant 0 : i32
    %c0_i32_1 = arith.constant 0 : i32
    return %c0_i32, %c0_i32_0 : i32, i32
  }
  func.func @transform_2(%arg0: i32) -> (i32, i32) {
    %c0_i32 = arith.constant 0 : i32
    %c0_i32_0 = arith.constant 0 : i32
    %c0_i32_1 = arith.constant 0 : i32
    return %c0_i32, %c0_i32_0 : i32, i32
  }
  func.func @transform_3(%arg0: i32) -> (i32, i32) {
    %c0_i32 = arith.constant 0 : i32
    %c0_i32_0 = arith.constant 0 : i32
    %c0_i32_1 = arith.constant 0 : i32
    return %c0_i32, %c0_i32_0 : i32, i32
  }
  func.func @transform_4(%arg0: i32) -> (i32, i32) {
    %c0_i32 = arith.constant 0 : i32
    %c0_i32_0 = arith.constant 0 : i32
    %c0_i32_1 = arith.constant 0 : i32
    return %c0_i32, %c0_i32_0 : i32, i32
  }
  func.func @transform_5(%arg0: i32) -> (i32, i32) {
    %c0_i32 = arith.constant 0 : i32
    %c0_i32_0 = arith.constant 0 : i32
    return %arg0, %c0_i32 : i32, i32
  }
}

</mosaic_0001>

<bundles_post_ra>
// kernel: tpu_custom_call.1
= control target key start
LH: loop header
LB: loop body
LE: loop exit
PB: predicated region body
PF: predicated region fallthrough
CT: control target
= control target key end

     0   :  { %10 = vsyncpa [#allocation3], 0  ;;  %s416_s0 = inlined_call_operand.hbm [shape: f32[16,32], index: 0, kind: input, shape index: {}]   ;;  %s417_s1 = inlined_call_operand.vmem [shape: f32[1,32], index: 1, kind: input, shape index: {}]   ;;  %s418_s2 = inlined_call_operand.vmem [shape: f32[1,32], index: 2, kind: input, shape index: {}]   ;;  %s419_s3 = inlined_call_operand.hbm [shape: f32[32,32], index: 3, kind: input, shape index: {}]   ;;  %s420_s4 = inlined_call_operand.vmem [shape: f32[1,32], index: 4, kind: input, shape index: {}]   ;;  %s421_s5 = inlined_call_operand.hbm [shape: f32[16,32], index: 5, kind: output, shape index: {}]  }
   0x1   :  { %11 = vsyncpa [#allocation6], 0 }
   0x2   :  { %12 = vsyncpa [#allocation4], 0  ;;  %s319_s18 = smov [#allocation2]   ;;  %s247_s22 = scalar_lea.hbm %s416_s0, 256 }
   0x3   :  { %s18_s19 = sshll.u32 %s319_s18, 4  ;;  %p248_p0 = scmp.ne.s32.totalorder %s416_s0, %s247_s22  ;;  %s19_s19 = int_to_ptr.vmem [resolvable:$true] %s18_s19 }
   0x4   :  { %p251_p1 = scmp.lt.u32.totalorder %s247_s22, %s416_s0 }
   0x6   :  { %p253_p2 = pnand %p251_p1, %p248_p0 }
   0x8   :  { %256 = shalt.err (!%p253_p2)
}
   0x9   :  { %s257_s27 = scalar_lea.vmem %s19_s19, 256  ;;  %p262_p4 = scmp.lt.s32.totalorder %s19_s19, %s19_s19 }
   0xa   :  { %p258_p3 = scmp.ne.s32.totalorder %s19_s19, %s257_s27  ;;  %p263_p5 = scmp.lt.s32.totalorder %s257_s27, %s257_s27 }
   0xc   :  { %p264_p6 = por %p263_p5, %p262_p4 }
   0xe   :  { %p265_p7 = pnand %p264_p6, %p258_p3 }
  0x10   :  { %268 = shalt.err (!%p265_p7)
}
  0x11   :  { %s320_s28 = smov 128   ;;  %s321_s29 = smov 8  }
  0x12   :  { %24 = dma.hbm_to_vmem [thread:$0]  %s416_s0, 256, %s19_s19, [#allocation3], %s320_s28, %s320_s28, %s321_s29  }
  0x13   :  { %s322_s7 = smov [#allocation5]   ;;  %s269_s11 = scalar_lea.hbm %s419_s3, 512 }
  0x14   :  { %s34_s8 = sshll.u32 %s322_s7, 4  ;;  %p270_p8 = scmp.ne.s32.totalorder %s419_s3, %s269_s11  ;;  %s35_s8 = int_to_ptr.vmem [resolvable:$true] %s34_s8 }
  0x15   :  { %p273_p9 = scmp.lt.u32.totalorder %s269_s11, %s419_s3 }
  0x17   :  { %p275_p10 = pnand %p273_p9, %p270_p8 }
  0x19   :  { %278 = shalt.err (!%p275_p10)
}
  0x1a   :  { %s279_s16 = scalar_lea.vmem %s35_s8, 512  ;;  %p284_p12 = scmp.lt.s32.totalorder %s35_s8, %s35_s8 }
  0x1b   :  { %p280_p11 = scmp.ne.s32.totalorder %s35_s8, %s279_s16  ;;  %p285_p13 = scmp.lt.s32.totalorder %s279_s16, %s279_s16 }
  0x1d   :  { %p286_p0 = por %p285_p13, %p284_p12 }
  0x1f   :  { %p287_p1 = pnand %p286_p0, %p280_p11 }
  0x21   :  { %290 = shalt.err (!%p287_p1)
}
  0x22   :  { %40 = dma.hbm_to_vmem [thread:$0]  %s419_s3, 512, %s35_s8, [#allocation6], %s320_s28, %s320_s28, %s321_s29  }
  0x23   :  { %313 = dma.done.wait [#allocation3], 256  }
  0x24   :  { %314 = vsyncadd [#allocation3], 4294967040 }
  0x25   :  { %315 = dma.done.wait [#allocation6], 512  }
  0x26   :  { %316 = vsyncadd [#allocation6], 4294966784  ;;  %vm53_vm0 = vcmask 261120   ;;  %v49_v0 = vld [vmem:[#allocation2] sm:$0xff]  ;;  %v50_v1 = vld [vmem:[#allocation2 + $0x8] sm:$0xff] }
  0x27   :  { %v54_v2 = vsel %vm53_vm0, %v49_v0, 0.0  ;;  %v57_v3 = vsel %vm53_vm0, %v50_v1, 0.0  ;;  %v96_v14 = vld [vmem:[#allocation5] sm:$0xff]  ;;  %v97_v15 = vld [vmem:[#allocation5 + $0x8] sm:$0xff]  ;;  %v98_v16 = vld [vmem:[#allocation5 + $0x10] sm:$0xff] }
  0x28   :  { %55 = vadd.xlane.f32.xlu0 %v54_v2  ;;  %v230_v17 = vpack.c.bf16 %v97_v15, %v96_v14  ;;  %v99_v18 = vld [vmem:[#allocation5 + $0x18] sm:$0xff]  ;;  %v208_v27 = vld [vmem:[%s417_s1] ss:$0 sm:$0xff]  ;;  %s323_s1 = smov [#allocation7]  }
  0x29   :  { %v234_v19 = vpack.c.bf16 %v99_v18, %v98_v16  ;;  %v209_v29 = vld [vmem:[%s418_s2] ss:$0 sm:$0xff]  ;;  %s195_s23 = sshll.u32 %s323_s1, 4  ;;  %s196_s23 = int_to_ptr.vmem [resolvable:$true] %s195_s23 }
  0x2a   :  { %231 = vmatprep.subr.bf16.mxu0 %v230_v17  ;;  %v210_v36 = vld [vmem:[%s420_s4] ss:$0 sm:$0xff]  ;;  %s291_s2 = scalar_lea.vmem %s196_s23, 256  ;;  %p296_p3 = scmp.lt.s32.totalorder %s196_s23, %s196_s23 }
  0x2b   :  { %233 = vmatpush3.bf16.msra.mxu0 %v230_v17  ;;  %p292_p2 = scmp.ne.s32.totalorder %s196_s23, %s291_s2  ;;  %p297_p4 = scmp.lt.s32.totalorder %s291_s2, %s291_s2 }
  0x2c   :  { %58 = vadd.xlane.f32.xlu0 %v57_v3  ;;  %235 = vmatprep.subr.bf16.mxu0 %v234_v19 }
  0x2d   :  { %p298_p5 = por %p297_p4, %p296_p3 }
  0x2f   :  { %237 = vmatpush3.bf16.msra.mxu0 %v234_v19  ;;  %p299_p6 = pnand %p298_p5, %p292_p2 }
  0xb5   :  { %v56_v4 = vpop.xlane.xlu0 %55 }
  0xb6   :  { %v60_v5 = vmul.f32 0.03125, %v56_v4 }
  0xb8   :  { %v62_v6 = vsub.f32 %v49_v0, %v60_v5 }
  0xb9   :  { %v59_v7 = vpop.xlane.xlu0 %58 }
  0xba   :  { %v61_v8 = vmul.f32 0.03125, %v59_v7  ;;  %v64_v9 = vmul.f32 %v62_v6, %v62_v6 }
  0xbc   :  { %v63_v10 = vsub.f32 %v50_v1, %v61_v8  ;;  %v66_v11 = vsel %vm53_vm0, %v64_v9, 0.0 }
  0xbd   :  { %67 = vadd.xlane.f32.xlu1 %v66_v11 }
  0xbe   :  { %v65_v12 = vmul.f32 %v63_v10, %v63_v10 }
  0xc0   :  { %v69_v13 = vsel %vm53_vm0, %v65_v12, 0.0 }
  0xc1   :  { %70 = vadd.xlane.f32.xlu1 %v69_v13 }
 0x14a   :  { %v68_v20 = vpop.xlane.xlu1 %67 }
 0x14b   :  { %v72_v21 = vmul.f32 0.03125, %v68_v20 }
 0x14d   :  { %v74_v22 = vadd.f32 1e-05, %v72_v21 }
 0x14e   :  { %v71_v23 = vpop.xlane.xlu1 %70 }
 0x14f   :  { %243 = vrsqrt.f32 %v74_v22  ;;  %v73_v24 = vmul.f32 0.03125, %v71_v23 }
 0x151   :  { %v75_v25 = vadd.f32 1e-05, %v73_v24 }
 0x153   :  { %245 = vrsqrt.f32 %v75_v25 }
 0x159   :  { %v244_v26 = vpop.eup %243 }
 0x15a   :  { %v78_v28 = vmul.f32 %v244_v26, %v62_v6 }
 0x15c   :  { %v86_v30 = vmul.f32 %v208_v27, %v78_v28 }
 0x15d   :  { %v246_v31 = vpop.eup %245 }
 0x15e   :  { %v79_v32 = vmul.f32 %v246_v31, %v63_v10  ;;  %v94_v33 = vadd.f32 %v209_v29, %v86_v30 }
 0x160   :  { %v87_v34 = vmul.f32 %v208_v27, %v79_v32  ;;  %227 = vmatprep.mubr.msk.f32.mxu0 %vm53_vm0, %v94_v33 }
 0x162   :  { %v95_v35 = vadd.f32 %v209_v29, %v87_v34 }
 0x164   :  { %228 = vmatmul.mubr.msk.f32.vlgmr.msra.gmra.mrb[0].mxu0 %vm53_vm0, %v95_v35 }
 0x237   :  { %v229_v37 = vpop.f32.mrb[0].mxu0 }
 0x238   :  { %v185_v38 = vadd.f32 %v229_v37, %v210_v36  ;;  %v179_v39 = vpop.f32.mrb[1].mxu0 }
 0x239   :  { %v180_v40 = vadd.f32 %v210_v36, %v179_v39 }
 0x23a   :  { %189 = vst.msk [vmem:[#allocation7 + $0x8] sm:$0xff] %vm53_vm0, %v185_v38 }
 0x23b   :  { %188 = vst.msk [vmem:[#allocation7] sm:$0xff] %vm53_vm0, %v180_v40 }
 0x23c   :  { %302 = shalt.err (!%p299_p6)
}
 0x23d   :  { %s303_s25 = scalar_lea.hbm %s421_s5, 256 }
 0x23e   :  { %p304_p7 = scmp.ne.s32.totalorder %s421_s5, %s303_s25  ;;  %p307_p8 = scmp.lt.u32.totalorder %s303_s25, %s421_s5 }
 0x240   :  { %p309_p9 = pnand %p307_p8, %p304_p7 }
 0x242   :  { %312 = shalt.err (!%p309_p9)
}
 0x243   :  { %201 = dma.vmem_to_hbm [thread:$0]  %s196_s23, 256, %s421_s5, [#allocation4], %s320_s28, %s320_s28, %s321_s29  }
 0x244   :  { %317 = dma.done.wait [#allocation4], 256  }
 0x245   :  { %318 = vsyncadd [#allocation4], 4294967040 }
 0x246   :  { %205 = vsyncpa [#allocation3], 1 }
 0x247   :  { %206 = vsyncpa [#allocation6], 1 }
 0x248   :  { %207 = vsyncpa [#allocation4], 1 }

</bundles_post_ra>
